<compile_context>
chip_gen: v7x
topology: tpu7x:2x2x1
jax: 0.10.0
libtpu: 0.0.40
codegen_flags: <defaults>
</compile_context>

<pallas_src>
import math
import functools

import jax
import jax.numpy as jnp
from jax.experimental import pallas as pl
from jax.experimental.pallas import tpu as pltpu


# ---------------------------------------------------------------------------
# helpers
# ---------------------------------------------------------------------------

_MXU_ALIGN = (256, 128)           # prefer 256-wide tiles (v6e/v7x MXU), else 128
_VMEM_CAP = 64 * 1024 * 1024      # never request more than v7x physical VMEM
_VMEM_FLOOR = 16 * 1024 * 1024    # v5e scoped default


def _pick_tile(dim, target, aligns):
    """Largest aligned divisor of `dim` that is <= target.

    Raises (instead of silently falling back to the full dimension, which at
    real RoBERTa vocab sizes produced ~50k-wide tiles that cannot fit VMEM).
    Pad the dimension (see _pad_cols) if no aligned divisor exists.
    """
    if dim <= target:
        return dim
    if isinstance(aligns, int):
        aligns = (aligns,)
    for a in aligns:
        t = (target // a) * a
        while t >= a:
            if dim % t == 0:
                return t
            t -= a
    raise ValueError(
        f"dim={dim} has no divisor aligned to {aligns} and <= {target}; "
        "pad the dimension to a multiple of 256 (see _pad_cols).")


def _pad_cols(w, multiple):
    """Zero-pad the last dim of `w` up to a multiple of `multiple`."""
    n = w.shape[-1]
    pad = (-n) % multiple
    if pad == 0:
        return w
    widths = [(0, 0)] * (w.ndim - 1) + [(0, pad)]
    return jnp.pad(w, widths)


def _vmem_budget(nbytes):
    """Explicit VMEM budget: 2x headroom, floored at the v5e scoped default,
    capped at v7x's 64 MiB physical VMEM."""
    return int(min(_VMEM_CAP, max(_VMEM_FLOOR, 2 * nbytes)))


def _erf_f32(x):
    # Abramowitz & Stegun 7.1.26 polynomial erf, max abs err ~1.5e-7.
    a1, a2, a3, a4, a5 = 0.254829592, -0.284496736, 1.421413741, -1.453152027, 1.061405429
    p = 0.3275911
    ax = jnp.abs(x)
    t = 1.0 / (1.0 + p * ax)
    poly = ((((a5 * t + a4) * t + a3) * t + a2) * t + a1) * t
    y = 1.0 - poly * jnp.exp(-ax * ax)
    return jnp.where(x >= 0, y, -y)


def _gelu_exact(x):
    # Exact (erf-based) GELU, matching HuggingFace RoBERTa's "gelu".
    return 0.5 * x * (1.0 + _erf_f32(x * 0.7071067811865476))


# ---------------------------------------------------------------------------
# Pallas kernels
# ---------------------------------------------------------------------------

def dense(x, w, b, *, activation=None, residual=None, ln=None, eps=1e-5,
          out_dtype=jnp.float32, tm=256, tn=512, tk=512, w_buffers=None):
    """y = LayerNorm?(act(x @ w + b) [+ residual]).

    x: [M, K]   w: [K, N]   b: [N]   residual: [M, N] or None
    ln: (gamma[1,N], beta[1,N]) or None  (fused epilogue; forces tn = N)
    Returns [M, N] of `out_dtype`.

    (M, N, K) grid, K last ("arbitrary") with f32 accumulation; MXU operands
    cast to bf16 in-kernel.  f32 outputs accumulate directly in the resident
    output block; otherwise a VMEM f32 scratch accumulator is used.
    """
    M, K = x.shape
    N = w.shape[1]
    fuse_ln = ln is not None
    has_res = residual is not None
    out_dtype = jnp.dtype(out_dtype)

    tm = _pick_tile(M, tm, 16)
    tn = N if fuse_ln else _pick_tile(N, tn, _MXU_ALIGN)
    tk = _pick_tile(K, tk, _MXU_ALIGN)
    gm, gn, gk = M // tm, N // tn, K // tk

    acc_in_out = out_dtype == jnp.float32    # use the output block as accumulator
    use_scratch = not acc_in_out

    def kernel(*refs):
        it = iter(refs)
        x_ref = next(it)
        w_ref = next(it)
        b_ref = next(it)
        r_ref = next(it) if has_res else None
        g_ref = next(it) if fuse_ln else None
        bt_ref = next(it) if fuse_ln else None
        o_ref = next(it)
        acc_ref = next(it) if use_scratch else o_ref

        @pl.when(pl.program_id(2) == 0)
        def _():
            acc_ref[...] = jnp.zeros_like(acc_ref)

        acc_ref[...] += jnp.dot(
            x_ref[...].astype(jnp.bfloat16),
            w_ref[...].astype(jnp.bfloat16),
            preferred_element_type=jnp.float32)

        @pl.when(pl.program_id(2) == pl.num_programs(2) - 1)
        def _():
            y = acc_ref[...] + b_ref[...].astype(jnp.float32)
            if activation == "gelu":
                y = _gelu_exact(y)
            if has_res:
                y = y + r_ref[...].astype(jnp.float32)
            if fuse_ln:
                mu = jnp.mean(y, axis=-1, keepdims=True)
                var = jnp.mean((y - mu) ** 2, axis=-1, keepdims=True)
                y = (y - mu) * jax.lax.rsqrt(var + eps)
                y = y * g_ref[...].astype(jnp.float32) + bt_ref[...].astype(jnp.float32)
            o_ref[...] = y.astype(o_ref.dtype)

    # weight spec (optionally deeper-buffered for the big streamed decoder weight)
    def _w_spec():
        if (w_buffers is not None and w_buffers > 2 and gn * gk >= w_buffers
                and hasattr(pl, "Buffered")):
            try:
                return pl.BlockSpec((tk, tn), lambda i, j, k: (k, j),
                                    pipeline_mode=pl.Buffered(w_buffers))
            except TypeError:  # jax without pipeline_mode kwarg
                pass
        return pl.BlockSpec((tk, tn), lambda i, j, k: (k, j))

    in_specs = [
        pl.BlockSpec((tm, tk), lambda i, j, k: (i, k)),
        _w_spec(),
        pl.BlockSpec((1, tn), lambda i, j, k: (0, j)),
    ]
    args = [x, w, b.reshape(1, N)]
    if has_res:
        in_specs.append(pl.BlockSpec((tm, tn), lambda i, j, k: (i, j)))
        args.append(residual)
    if fuse_ln:
        gamma, beta = ln
        in_specs.append(pl.BlockSpec((1, tn), lambda i, j, k: (0, j)))
        in_specs.append(pl.BlockSpec((1, tn), lambda i, j, k: (0, j)))
        args += [gamma.reshape(1, N), beta.reshape(1, N)]

    scratch = [] if acc_in_out else [pltpu.VMEM((tm, tn), jnp.float32)]

    est = (2 * tm * tk * x.dtype.itemsize
           + max(2, (w_buffers or 2)) * tk * tn * w.dtype.itemsize
           + 2 * tn * 4
           + (2 * tm * tn * residual.dtype.itemsize if has_res else 0)
           + (4 * tn * 4 if fuse_ln else 0)
           + 2 * tm * tn * out_dtype.itemsize
           + (0 if acc_in_out else tm * tn * 4)
           + 2 * tm * tn * 4)   # epilogue temporaries headroom

    return pl.pallas_call(
        kernel,
        out_shape=jax.ShapeDtypeStruct((M, N), out_dtype),
        grid=(gm, gn, gk),
        in_specs=in_specs,
        out_specs=pl.BlockSpec((tm, tn), lambda i, j, k: (i, j)),
        scratch_shapes=scratch,
        compiler_params=pltpu.CompilerParams(
            dimension_semantics=("parallel", "parallel", "arbitrary"),
            vmem_limit_bytes=_vmem_budget(est)),
    )(*args)


def layernorm(x, gamma, beta, *, eps=1e-5, out_dtype=jnp.float32, tm=256):
    """Standalone M-tiled LayerNorm over the last dim (embedding LN only)."""
    M, H = x.shape
    out_dtype = jnp.dtype(out_dtype)
    tm = _pick_tile(M, tm, 16)

    def kernel(x_ref, g_ref, b_ref, o_ref):
        xv = x_ref[...].astype(jnp.float32)
        mu = jnp.mean(xv, axis=-1, keepdims=True)
        var = jnp.mean((xv - mu) ** 2, axis=-1, keepdims=True)
        y = (xv - mu) * jax.lax.rsqrt(var + eps)
        o_ref[...] = (y * g_ref[...] + b_ref[...]).astype(o_ref.dtype)

    est = (2 * tm * H * x.dtype.itemsize + 4 * H * 4
           + 2 * tm * H * out_dtype.itemsize + 2 * tm * H * 4)

    return pl.pallas_call(
        kernel,
        out_shape=jax.ShapeDtypeStruct((M, H), out_dtype),
        grid=(M // tm,),
        in_specs=[
            pl.BlockSpec((tm, H), lambda i: (i, 0)),
            pl.BlockSpec((1, H), lambda i: (0, 0)),
            pl.BlockSpec((1, H), lambda i: (0, 0)),
        ],
        out_specs=pl.BlockSpec((tm, H), lambda i: (i, 0)),
        compiler_params=pltpu.CompilerParams(
            dimension_semantics=("parallel",),
            vmem_limit_bytes=_vmem_budget(est)),
    )(x, gamma, beta)


def mha_attention(q, kt, v, mask_bias, *, tq=256):
    """Head-major softmax attention, one (batch, head, query-tile) per grid step.

    q:  [B, nH, S, dh] bf16  (1/sqrt(dh) folded into the Q projection weights)
    kt: [B, nH, dh, S] bf16  (K pre-transposed at the host -> plain MXU matmul,
                              no in-kernel transpose)
    v:  [B, nH, S, dh] bf16
    mask_bias: [B, 1, S] f32 additive (-1e9 on padding)
    returns [B, nH, S, dh] bf16 context.

    Only one head's [tq,dh]/[dh,S]/[S,dh] tiles are live per step (no [S,3H]
    value and no lane-concat); grid axes are all "parallel" so v7x's two
    TensorCores split batch/head/query work.
    """
    B, nH, S, dh = q.shape
    tq = _pick_tile(S, tq, 16)
    gq = S // tq

    def kernel(q_ref, kt_ref, v_ref, m_ref, o_ref):
        s = jnp.dot(q_ref[...], kt_ref[...],
                    preferred_element_type=jnp.float32)            # [tq, S]
        s = s + m_ref[...].astype(jnp.float32)
        s = s - jnp.max(s, axis=-1, keepdims=True)
        p = jnp.exp(s)
        inv = pl.reciprocal(jnp.sum(p, axis=-1, keepdims=True), approx=True)
        ctx = jnp.dot(p.astype(jnp.bfloat16), v_ref[...],
                      preferred_element_type=jnp.float32)           # [tq, dh]
        o_ref[...] = (ctx * inv).astype(o_ref.dtype)

    est = (2 * (tq * dh + dh * S + S * dh) * 2   # q / kt / v bf16, double-buffered
           + 2 * S * 4                           # mask bias
           + 2 * tq * dh * 2                     # output
           + 3 * tq * S * 4)                     # s / p temporaries

    return pl.pallas_call(
        kernel,
        out_shape=jax.ShapeDtypeStruct((B, nH, S, dh), jnp.bfloat16),
        grid=(B, nH, gq),
        in_specs=[
            pl.BlockSpec((None, None, tq, dh), lambda b, h, t: (b, h, t, 0)),
            pl.BlockSpec((None, None, dh, S), lambda b, h, t: (b, h, 0, 0)),
            pl.BlockSpec((None, None, S, dh), lambda b, h, t: (b, h, 0, 0)),
            pl.BlockSpec((None, 1, S), lambda b, h, t: (b, 0, 0)),
        ],
        out_specs=pl.BlockSpec((None, None, tq, dh), lambda b, h, t: (b, h, t, 0)),
        compiler_params=pltpu.CompilerParams(
            dimension_semantics=("parallel", "parallel", "parallel"),
            vmem_limit_bytes=_vmem_budget(est)),
    )(q, kt, v, mask_bias)


# ---------------------------------------------------------------------------
# Synthetic RoBERTa-MLM parameters (deterministic)
# ---------------------------------------------------------------------------

def init_params(key, cfg):
    H, V, I = cfg["hidden"], cfg["vocab"], cfg["intermediate"]
    L, S, nH = cfg["layers"], cfg["seq"], cfg["heads"]
    dh = H // nH
    scale = 1.0 / math.sqrt(dh)

    keys = iter(jax.random.split(key, 256))

    def w(shape):
        return jax.random.normal(next(keys), shape, jnp.float32) * 0.02

    params = {
        "word_emb": w((V, H)),
        "pos_emb": w((S, H)),
        "type_emb": w((1, H)),
        "emb_ln_g": jnp.ones((1, H), jnp.float32),
        "emb_ln_b": jnp.zeros((1, H), jnp.float32),
        "layers": [],
        "lm_dense_w": w((H, H)).astype(jnp.bfloat16),
        "lm_dense_b": jnp.zeros((H,), jnp.float32),
        "lm_ln_g": jnp.ones((1, H), jnp.float32),
        "lm_ln_b": jnp.zeros((1, H), jnp.float32),
        # decoder: vocab columns zero-padded to a multiple of 256 so the N axis
        # always has an MXU-aligned tile (real RoBERTa V=50265 -> 50432).
        "lm_dec_w": _pad_cols(w((H, V)), 256).astype(jnp.bfloat16),
        "lm_dec_b": _pad_cols(jnp.zeros((V,), jnp.float32), 256),
    }
    zeros_h = jnp.zeros((H,), jnp.float32)
    for _ in range(L):
        wq, wk, wv = w((H, H)), w((H, H)), w((H, H))
        params["layers"].append({
            # fused QKV projection; 1/sqrt(dh) folded into the Q block
            "w_qkv": jnp.concatenate([wq * scale, wk, wv], axis=1).astype(jnp.bfloat16),
            "b_qkv": jnp.concatenate([zeros_h * scale, zeros_h, zeros_h], axis=0),
            "wo": w((H, H)).astype(jnp.bfloat16), "bo": jnp.zeros((H,), jnp.float32),
            "ln1_g": jnp.ones((1, H), jnp.float32), "ln1_b": jnp.zeros((1, H), jnp.float32),
            "w1": w((H, I)).astype(jnp.bfloat16), "b1": jnp.zeros((I,), jnp.float32),
            "w2": w((I, H)).astype(jnp.bfloat16), "b2": jnp.zeros((H,), jnp.float32),
            "ln2_g": jnp.ones((1, H), jnp.float32), "ln2_b": jnp.zeros((1, H), jnp.float32),
        })
    return params


# ---------------------------------------------------------------------------
# PromptModel.forward
# ---------------------------------------------------------------------------

def prompt_model_forward(params, prompt_input_ids, prompt_attention_mask, mask_pos,
                         cfg, need_full_scores=True):
    B, S = prompt_input_ids.shape
    H, nH, V = cfg["hidden"], cfg["heads"], cfg["vocab"]
    dh = H // nH

    # --- embeddings (gather glue) + tiled LN kernel; activations kept bf16 ----
    x = (params["word_emb"][prompt_input_ids]
         + params["pos_emb"][jnp.arange(S)][None, :, :]
         + params["type_emb"][0][None, None, :])
    x = layernorm(x.reshape(B * S, H).astype(jnp.float32),
                  params["emb_ln_g"], params["emb_ln_b"], out_dtype=jnp.bfloat16)

    mask_bias = ((1.0 - prompt_attention_mask.astype(jnp.float32)) * -1e9).reshape(B, 1, S)

    # --- transformer encoder layers -------------------------------------------
    for layer in params["layers"]:
        qkv = dense(x, layer["w_qkv"], layer["b_qkv"], out_dtype=jnp.bfloat16)  # [B*S, 3H]
        qkv = qkv.reshape(B, S, 3, nH, dh)
        q = qkv[:, :, 0].transpose(0, 2, 1, 3)               # [B, nH, S, dh]
        kt = qkv[:, :, 1].transpose(0, 2, 3, 1)              # [B, nH, dh, S] pre-transposed K
        v = qkv[:, :, 2].transpose(0, 2, 1, 3)               # [B, nH, S, dh]
        ctx = mha_attention(q, kt, v, mask_bias)             # [B, nH, S, dh]
        ctx = ctx.transpose(0, 2, 1, 3).reshape(B * S, H)
        # output projection with fused residual-add + LayerNorm epilogue
        x = dense(ctx, layer["wo"], layer["bo"],
                  residual=x, ln=(layer["ln1_g"], layer["ln1_b"]),
                  out_dtype=jnp.bfloat16)
        # FFN: up-proj + exact GELU, down-proj with fused residual + LN
        h = dense(x, layer["w1"], layer["b1"], activation="gelu", out_dtype=jnp.bfloat16)
        x = dense(h, layer["w2"], layer["b2"],
                  residual=x, ln=(layer["ln2_g"], layer["ln2_b"]),
                  out_dtype=jnp.bfloat16)

    # --- MLM head: dense + GELU + LN fused over all tokens --------------------
    h_tok = dense(x, params["lm_dense_w"], params["lm_dense_b"],
                  activation="gelu", ln=(params["lm_ln_g"], params["lm_ln_b"]),
                  out_dtype=jnp.bfloat16)                     # [B*S, H]

    # --- prompt readout: gather <mask> rows FIRST, then decode only those rows
    #     against the label-word columns (S-times fewer FLOPs / HBM than the
    #     full vocab matmul for the logits the classifier actually uses).
    mp = mask_pos.reshape(-1)                                 # [B]
    label_ids = jnp.asarray(cfg["label_ids"], dtype=jnp.int32)
    h_mask = h_tok.reshape(B, S, H)[jnp.arange(B), mp]        # [B, H]
    w_lbl = params["lm_dec_w"][:, label_ids]                  # [H, num_labels]
    b_lbl = params["lm_dec_b"][label_ids]
    logits = dense(h_mask, w_lbl, b_lbl, out_dtype=jnp.float32)   # [B, num_labels]

    scores = None
    if need_full_scores:
        # full [B, S, V] vocab scores (= out[0] of the PyTorch module); the bf16
        # activation stays resident (large tm) while the padded decoder weight
        # streams through in tk=256 x tn=512 tiles.
        scores = dense(h_tok, params["lm_dec_w"], params["lm_dec_b"],
                       out_dtype=jnp.float32,
                       tm=4096, tn=512, tk=256, w_buffers=3)      # [B*S, V_pad]
        scores = scores[:, :V].reshape(B, S, V)

    return logits, scores


# ---------------------------------------------------------------------------

if __name__ == "__main__":
    cfg = dict(
        vocab=64,
        hidden=32,
        heads=4,
        layers=2,
        intermediate=64,
        seq=8,
        label_ids=[17, 23],   # stands in for tokenizer.encode(label_word_list)
    )

    root = jax.random.PRNGKey(0)
    k_param, k_ids = jax.random.split(root)
    params = init_params(k_param, cfg)

    B, S = 2, cfg["seq"]
    prompt_input_ids = jax.random.randint(k_ids, (B, S), 0, cfg["vocab"], dtype=jnp.int32)
    prompt_attention_mask = jnp.ones((B, S), dtype=jnp.int32).at[1, 6:].set(0)
    mask_pos = jnp.array([[3], [2]], dtype=jnp.int32)

    fwd = functools.partial(prompt_model_forward, cfg=cfg, need_full_scores=True)
    logits, scores = fwd(params, prompt_input_ids, prompt_attention_mask, mask_pos)

    jax.block_until_ready(logits)
    jax.block_until_ready(scores)
    assert logits.shape == (B, len(cfg["label_ids"]))
    assert scores.shape == (B, S, cfg["vocab"])
    print("KERNEL_OK")
</pallas_src>

<mosaic_0001>
module attributes {stable_mosaic.version = 11 : i64} {
  func.func @kernel(%arg0: i32, %arg1: memref<16x32xf32, #tpu.memory_space<vmem>>, %arg2: memref<1x32xf32, #tpu.memory_space<vmem>>, %arg3: memref<1x32xf32, #tpu.memory_space<vmem>>, %arg4: memref<16x32xbf16, #tpu.memory_space<vmem>>) attributes {dimension_semantics = [#tpu.dimension_semantics<parallel>], iteration_bounds = array<i64: 1>, scalar_prefetch = 0 : i64, scratch_operands = 0 : i64, tpu.core_type = #tpu.core_type<tc>, window_params = [{transform_indices = @transform_0, window_bounds = array<i64: 16, 32>}, {pipeline_mode = #tpu.pipeline_mode<synchronous>, transform_indices = @transform_1, window_bounds = array<i64: 1, 32>}, {pipeline_mode = #tpu.pipeline_mode<synchronous>, transform_indices = @transform_2, window_bounds = array<i64: 1, 32>}, {transform_indices = @transform_3, window_bounds = array<i64: 16, 32>}]} {
    %c0 = arith.constant 0 : index
    %c0_0 = arith.constant 0 : index
    %0 = vector.load %arg1[%c0, %c0_0] : memref<16x32xf32, #tpu.memory_space<vmem>>, vector<16x32xf32>
    %cst = arith.constant dense<0.000000e+00> : vector<16xf32>
    %1 = vector.multi_reduction <add>, %0, %cst [1] : vector<16x32xf32> to vector<16xf32>
    %2 = vector.shape_cast %1 : vector<16xf32> to vector<16x1xf32>
    %cst_1 = arith.constant 3.200000e+01 : f32
    %3 = vector.broadcast %cst_1 : f32 to vector<16x1xf32>
    %4 = arith.divf %2, %3 : vector<16x1xf32>
    %5 = vector.broadcast %4 : vector<16x1xf32> to vector<16x32xf32>
    %6 = arith.subf %0, %5 : vector<16x32xf32>
    %7 = arith.mulf %6, %6 : vector<16x32xf32>
    %cst_2 = arith.constant dense<0.000000e+00> : vector<16xf32>
    %8 = vector.multi_reduction <add>, %7, %cst_2 [1] : vector<16x32xf32> to vector<16xf32>
    %9 = vector.shape_cast %8 : vector<16xf32> to vector<16x1xf32>
    %cst_3 = arith.constant 3.200000e+01 : f32
    %10 = vector.broadcast %cst_3 : f32 to vector<16x1xf32>
    %11 = arith.divf %9, %10 : vector<16x1xf32>
    %12 = vector.broadcast %4 : vector<16x1xf32> to vector<16x32xf32>
    %13 = arith.subf %0, %12 : vector<16x32xf32>
    %cst_4 = arith.constant 9.99999974E-6 : f32
    %14 = vector.broadcast %cst_4 : f32 to vector<16x1xf32>
    %15 = arith.addf %11, %14 : vector<16x1xf32>
    %16 = math.rsqrt %15 : vector<16x1xf32>
    %17 = vector.broadcast %16 : vector<16x1xf32> to vector<16x32xf32>
    %18 = arith.mulf %13, %17 : vector<16x32xf32>
    %c0_5 = arith.constant 0 : index
    %c0_6 = arith.constant 0 : index
    %19 = vector.load %arg2[%c0_5, %c0_6] : memref<1x32xf32, #tpu.memory_space<vmem>>, vector<1x32xf32>
    %20 = vector.broadcast %19 : vector<1x32xf32> to vector<16x32xf32>
    %21 = arith.mulf %18, %20 : vector<16x32xf32>
    %c0_7 = arith.constant 0 : index
    %c0_8 = arith.constant 0 : index
    %22 = vector.load %arg3[%c0_7, %c0_8] : memref<1x32xf32, #tpu.memory_space<vmem>>, vector<1x32xf32>
    %23 = vector.broadcast %22 : vector<1x32xf32> to vector<16x32xf32>
    %24 = arith.addf %21, %23 : vector<16x32xf32>
    %25 = arith.truncf %24 : vector<16x32xf32> to vector<16x32xbf16>
    %c0_9 = arith.constant 0 : index
    %c0_10 = arith.constant 0 : index
    %26 = vector.load %arg4[%c0_9, %c0_10] : memref<16x32xbf16, #tpu.memory_space<vmem>>, vector<16x32xbf16>
    tpu.vector_store %arg4[%c0_9, %c0_10], %25 {strides = array<i32>} : memref<16x32xbf16, #tpu.memory_space<vmem>>, vector<16x32xbf16>,
    return
  }
  func.func @transform_0(%arg0: i32) -> (i32, i32) {
    %c0_i32 = arith.constant 0 : i32
    %c0_i32_0 = arith.constant 0 : i32
    return %arg0, %c0_i32 : i32, i32
  }
  func.func @transform_1(%arg0: i32) -> (i32, i32) {
    %c0_i32 = arith.constant 0 : i32
    %c0_i32_0 = arith.constant 0 : i32
    %c0_i32_1 = arith.constant 0 : i32
    return %c0_i32, %c0_i32_0 : i32, i32
  }
  func.func @transform_2(%arg0: i32) -> (i32, i32) {
    %c0_i32 = arith.constant 0 : i32
    %c0_i32_0 = arith.constant 0 : i32
    %c0_i32_1 = arith.constant 0 : i32
    return %c0_i32, %c0_i32_0 : i32, i32
  }
  func.func @transform_3(%arg0: i32) -> (i32, i32) {
    %c0_i32 = arith.constant 0 : i32
    %c0_i32_0 = arith.constant 0 : i32
    return %arg0, %c0_i32 : i32, i32
  }
}

</mosaic_0001>

<bundles_post_ra>
// kernel: tpu_custom_call.1
= control target key start
LH: loop header
LB: loop body
LE: loop exit
PB: predicated region body
PF: predicated region fallthrough
CT: control target
= control target key end

     0   :  { %8 = vsyncpa [#allocation3], 0  ;;  %s229_s0 = inlined_call_operand.hbm [shape: f32[16,32], index: 0, kind: input, shape index: {}]   ;;  %s230_s1 = inlined_call_operand.vmem [shape: f32[1,32], index: 1, kind: input, shape index: {}]   ;;  %s231_s2 = inlined_call_operand.vmem [shape: f32[1,32], index: 2, kind: input, shape index: {}]   ;;  %s232_s3 = inlined_call_operand.hbm [shape: bf16[16,32], index: 3, kind: output, shape index: {}]  }
   0x1   :  { %9 = vsyncpa [#allocation4], 0  ;;  %s169_s12 = smov [#allocation2]   ;;  %s121_s16 = scalar_lea.hbm %s229_s0, 256 }
   0x2   :  { %s15_s13 = sshll.u32 %s169_s12, 4  ;;  %p122_p0 = scmp.ne.s32.totalorder %s229_s0, %s121_s16  ;;  %s16_s13 = int_to_ptr.vmem [resolvable:$true] %s15_s13 }
   0x3   :  { %p125_p1 = scmp.lt.u32.totalorder %s121_s16, %s229_s0 }
   0x5   :  { %p127_p2 = pnand %p125_p1, %p122_p0 }
   0x7   :  { %130 = shalt.err (!%p127_p2)
}
   0x8   :  { %s131_s21 = scalar_lea.vmem %s16_s13, 256  ;;  %p136_p4 = scmp.lt.s32.totalorder %s16_s13, %s16_s13 }
   0x9   :  { %p132_p3 = scmp.ne.s32.totalorder %s16_s13, %s131_s21  ;;  %p137_p5 = scmp.lt.s32.totalorder %s131_s21, %s131_s21 }
   0xb   :  { %p138_p6 = por %p137_p5, %p136_p4 }
   0xd   :  { %p139_p7 = pnand %p138_p6, %p132_p3 }
   0xf   :  { %142 = shalt.err (!%p139_p7)
}
  0x10   :  { %s170_s22 = smov 128   ;;  %s171_s23 = smov 8  }
  0x11   :  { %21 = dma.hbm_to_vmem [thread:$0]  %s229_s0, 256, %s16_s13, [#allocation3], %s170_s22, %s170_s22, %s171_s23  }
  0x12   :  { %165 = dma.done.wait [#allocation3], 256  }
  0x13   :  { %166 = vsyncadd [#allocation3], 4294967040  ;;  %vm31_vm0 = vcmask 261120   ;;  %v29_v0 = vld [vmem:[#allocation2] sm:$0xff]  ;;  %v30_v1 = vld [vmem:[#allocation2 + $0x8] sm:$0xff]  ;;  %vm85_vm1 = vcmask 257024  }
  0x14   :  { %v32_v2 = vsel %vm31_vm0, %v29_v0, 0.0  ;;  %v35_v3 = vsel %vm31_vm0, %v30_v1, 0.0  ;;  %v105_v21 = vld [vmem:[%s230_s1] ss:$0 sm:$0xff]  ;;  %s172_s29 = smov [#allocation5]  }
  0x15   :  { %33 = vadd.xlane.f32.xlu0 %v32_v2  ;;  %v106_v23 = vld [vmem:[%s231_s2] ss:$0 sm:$0xff]  ;;  %s93_s30 = sshll.u32 %s172_s29, 4  ;;  %s94_s30 = int_to_ptr.vmem [resolvable:$true] %s93_s30 }
  0x16   :  { %s143_s1 = scalar_lea.vmem %s94_s30, 128  ;;  %p148_p9 = scmp.lt.s32.totalorder %s94_s30, %s94_s30 }
  0x17   :  { %p144_p8 = scmp.ne.s32.totalorder %s94_s30, %s143_s1  ;;  %p149_p10 = scmp.lt.s32.totalorder %s143_s1, %s143_s1 }
  0x19   :  { %36 = vadd.xlane.f32.xlu0 %v35_v3  ;;  %p150_p11 = por %p149_p10, %p148_p9 }
  0x1b   :  { %p151_p12 = pnand %p150_p11, %p144_p8 }
  0xa2   :  { %v34_v4 = vpop.xlane.xlu0 %33 }
  0xa3   :  { %v39_v5 = vmul.f32 0.03125, %v34_v4 }
  0xa5   :  { %v41_v6 = vsub.f32 %v29_v0, %v39_v5 }
  0xa6   :  { %v37_v7 = vpop.xlane.xlu0 %36 }
  0xa7   :  { %v40_v8 = vmul.f32 0.03125, %v37_v7  ;;  %v43_v9 = vmul.f32 %v41_v6, %v41_v6 }
  0xa9   :  { %v42_v10 = vsub.f32 %v30_v1, %v40_v8  ;;  %v45_v11 = vsel %vm31_vm0, %v43_v9, 0.0 }
  0xaa   :  { %46 = vadd.xlane.f32.xlu1 %v45_v11 }
  0xab   :  { %v44_v12 = vmul.f32 %v42_v10, %v42_v10 }
  0xad   :  { %v48_v13 = vsel %vm31_vm0, %v44_v12, 0.0 }
  0xae   :  { %49 = vadd.xlane.f32.xlu1 %v48_v13 }
 0x137   :  { %v47_v14 = vpop.xlane.xlu1 %46 }
 0x138   :  { %v51_v15 = vmul.f32 0.03125, %v47_v14 }
 0x13a   :  { %v53_v16 = vadd.f32 1e-05, %v51_v15 }
 0x13b   :  { %v50_v17 = vpop.xlane.xlu1 %49 }
 0x13c   :  { %117 = vrsqrt.f32 %v53_v16  ;;  %v52_v18 = vmul.f32 0.03125, %v50_v17 }
 0x13e   :  { %v54_v19 = vadd.f32 1e-05, %v52_v18 }
 0x140   :  { %119 = vrsqrt.f32 %v54_v19 }
 0x146   :  { %v118_v20 = vpop.eup %117 }
 0x147   :  { %v57_v22 = vmul.f32 %v118_v20, %v41_v6 }
 0x149   :  { %v66_v24 = vmul.f32 %v105_v21, %v57_v22 }
 0x14a   :  { %v120_v25 = vpop.eup %119 }
 0x14b   :  { %v58_v26 = vmul.f32 %v120_v25, %v42_v10  ;;  %v75_v27 = vadd.f32 %v106_v23, %v66_v24 }
 0x14d   :  { %v67_v28 = vmul.f32 %v105_v21, %v58_v26  ;;  %v109_v29 = vpack.c.bf16 %v75_v27, %v75_v27 }
 0x14f   :  { %v76_v30 = vadd.f32 %v106_v23, %v67_v28  ;;  %86 = vst.msk [vmem:[#allocation5] sm:$0xf] %vm85_vm1, %v109_v29 }
 0x151   :  { %v110_v31 = vpack.c.bf16 %v76_v30, %v76_v30 }
 0x153   :  { %87 = vst.msk [vmem:[#allocation5 + $0x4] sm:$0xf] %vm85_vm1, %v110_v31 }
 0x154   :  { %154 = shalt.err (!%p151_p12)
}
 0x155   :  { %s155_s5 = scalar_lea.hbm %s232_s3, 128 }
 0x156   :  { %p156_p13 = scmp.ne.s32.totalorder %s232_s3, %s155_s5  ;;  %p159_p0 = scmp.lt.u32.totalorder %s155_s5, %s232_s3 }
 0x158   :  { %p161_p1 = pnand %p159_p0, %p156_p13 }
 0x15a   :  { %164 = shalt.err (!%p161_p1)
}
 0x15b   :  { %s173_s10 = smov 64   ;;  %s174_s11 = smov 4  }
 0x15c   :  { %99 = dma.vmem_to_hbm [thread:$0]  %s94_s30, 128, %s232_s3, [#allocation4], %s173_s10, %s173_s10, %s174_s11  }
 0x15d   :  { %167 = dma.done.wait [#allocation4], 128  }
 0x15e   :  { %168 = vsyncadd [#allocation4], 4294967168 }
 0x15f   :  { %103 = vsyncpa [#allocation3], 1 }
 0x160   :  { %104 = vsyncpa [#allocation4], 1 }

</bundles_post_ra>
